<compile_context>
chip_gen: v6e
topology: v6e:2x2x1
jax: 0.10.0
libtpu: 0.0.40
codegen_flags: <defaults>
</compile_context>

<pallas_src>
import jax
import jax.numpy as jnp
from jax.experimental import pallas as pl
from jax.experimental.pallas import tpu as pltpu

FILTER_NUM = 100            # self.filter_num
FILTER_PAD = 128            # lane-aligned filter count (zero-padded)
KERNEL_LIST = (2, 3, 4)     # self.kernel_list
K_MAX = max(KERNEL_LIST)
NUM_GROUPS = len(KERNEL_LIST)
NGF = NUM_GROUPS * FILTER_PAD          # 384 = 3 x 128 lanes
EMBED_DIM = 32              # embed_dim
K_FOLD = K_MAX * EMBED_DIM  # 128 = contraction depth of the fused conv matmul
OUTPUT_SIZE = 256           # output_size_of_cnn


def textcnn_kernel(x_ref, w_ref, b_ref, mask_ref, fcw_ref, fcb_ref, out_ref):
    bt, s, e = x_ref.shape                      # (batch tile, sentence len, embed dim)
    r = bt * s

    x2 = x_ref[...].reshape(r, e)               # (Bt*S, E) f32

    # im2col along the contraction dim: lanes [i*E, (i+1)*E) hold the input shifted
    # down by i rows (XLU sublane rotate).  Rows that wrap at the tile edge only ever
    # feed window starts that the additive mask removes before the max-pool.
    # TODO(synk): wrapped/zero-weight taps rely on finite inputs (NaN/Inf upstream
    # padding would poison shorter-kernel groups where PyTorch would not).
    taps = [x2] + [pltpu.roll(x2, r - i, 0) for i in range(1, K_MAX)]
    xk = jnp.concatenate(taps, axis=-1).astype(jnp.bfloat16)        # (Bt*S, 128)

    # Single fused conv matmul for all three kernel sizes: K = 128, N = 3*128.
    conv = jnp.dot(xk, w_ref[...], preferred_element_type=jnp.float32)   # (Bt*S, 384) f32

    # Additive -1e30 mask (precomputed host-side) kills window starts past the
    # sentence end for each kernel size, then global max-pool over positions
    # (AdaptiveMaxPool2d((1, 1))).  Pool stays in f32 (sentinel-safe).
    conv = conv.reshape(bt, s, NGF) + mask_ref[...]
    pooled = jnp.max(conv, axis=1)                                   # (Bt, 384)

    # Bias + ReLU hoisted past the pool: max(relu(z + b)) == relu(max(z) + b).
    feat = jnp.maximum(pooled + b_ref[...], 0.0)

    # nn.Dropout(0.5): eval-mode identity.
    out = jnp.dot(feat.astype(jnp.bfloat16), fcw_ref[...],
                  preferred_element_type=jnp.float32)
    out_ref[...] = (out + fcb_ref[...]).astype(out_ref.dtype)


def _window_mask(s):
    """Additive validity mask (s, NGF): 0 where window start p <= s - k, else -1e30."""
    pos = jnp.arange(s, dtype=jnp.int32)
    cols = []
    for k in KERNEL_LIST:                       # k derived from KERNEL_LIST, not lane group
        col = jnp.where(pos <= s - k, 0.0, -1e30).astype(jnp.float32)
        cols.append(jnp.broadcast_to(col[:, None], (s, FILTER_PAD)))
    return jnp.concatenate(cols, axis=-1)       # (s, 384)


def textcnn_forward(x, params, *, batch_tile=None):
    b, s, e = x.shape
    assert e == EMBED_DIM and s >= K_MAX

    if batch_tile is None:
        if b >= 16:
            # 8-aligned tile (keeps the output BlockSpec sublane-legal), capped at 256
            # (conv f32 intermediate ~6 MiB at bt=256, under v5e's 16 MiB scoped VMEM),
            # and sized so the parallel grid has >= 2 steps for v7x's two TensorCores.
            bt = min(256, ((pl.cdiv(b, 2) + 7) // 8) * 8)
        else:
            bt = b                              # tiny batch: single full-array block
    else:
        bt = batch_tile

    b_pad = pl.cdiv(b, bt) * bt
    if b_pad != b:
        x = jnp.pad(x, ((0, b_pad - b), (0, 0), (0, 0)))

    mask = _window_mask(s)                      # (s, 384) f32, VMEM-resident in kernel

    out = pl.pallas_call(
        textcnn_kernel,
        out_shape=jax.ShapeDtypeStruct((b_pad, OUTPUT_SIZE), jnp.float32),
        grid_spec=pltpu.PrefetchScalarGridSpec(
            num_scalar_prefetch=0,
            grid=(b_pad // bt,),
            in_specs=[
                pl.BlockSpec((bt, s, e), lambda i: (i, 0, 0)),            # x tile
                pl.BlockSpec((K_FOLD, NGF), lambda i: (0, 0)),            # folded conv weights
                pl.BlockSpec((1, NGF), lambda i: (0, 0)),                 # conv biases
                pl.BlockSpec((s, NGF), lambda i: (0, 0)),                 # additive mask
                pl.BlockSpec((NGF, OUTPUT_SIZE), lambda i: (0, 0)),       # fc weight
                pl.BlockSpec((1, OUTPUT_SIZE), lambda i: (0, 0)),         # fc bias
            ],
            out_specs=pl.BlockSpec((bt, OUTPUT_SIZE), lambda i: (i, 0)),
        ),
        compiler_params=pltpu.CompilerParams(
            dimension_semantics=("parallel",)),
    )(x, params["w_fold"], params["b_all"], mask, params["fc_w"], params["fc_b"])
    return out[:b]


def init_params(key):
    """Deterministic synthetic parameters in native PyTorch layouts."""
    keys = jax.random.split(key, 8)
    raw = {}
    for idx, k in enumerate(KERNEL_LIST):
        raw[f"conv_w{k}"] = jax.random.normal(
            keys[2 * idx], (FILTER_NUM, 1, k, EMBED_DIM), jnp.float32) * 0.1
        raw[f"conv_b{k}"] = jax.random.normal(
            keys[2 * idx + 1], (FILTER_NUM,), jnp.float32) * 0.1
    raw["fc_w"] = jax.random.normal(
        keys[6], (OUTPUT_SIZE, FILTER_NUM * NUM_GROUPS), jnp.float32) * 0.05
    raw["fc_b"] = jax.random.normal(keys[7], (OUTPUT_SIZE,), jnp.float32) * 0.05
    return raw


def pack_params(raw):
    """Pad filters 100 -> 128, fuse the 3 convs along N, fold taps along K, cast to bf16."""
    w_all = jnp.zeros((K_MAX, EMBED_DIM, NGF), jnp.float32)      # per-tap combined weight
    b_all = jnp.zeros((1, NGF), jnp.float32)
    fc_w = jnp.zeros((NGF, OUTPUT_SIZE), jnp.float32)            # zero rows at padded filters
    for g, k in enumerate(KERNEL_LIST):
        lo = g * FILTER_PAD
        wk = raw[f"conv_w{k}"][:, 0]                             # (F, k, E)
        for i in range(k):                                       # taps i >= k stay zero
            w_all = w_all.at[i, :, lo:lo + FILTER_NUM].set(wk[:, i, :].T)
        b_all = b_all.at[0, lo:lo + FILTER_NUM].set(raw[f"conv_b{k}"])
        fc_w = fc_w.at[lo:lo + FILTER_NUM, :].set(
            raw["fc_w"][:, g * FILTER_NUM:(g + 1) * FILTER_NUM].T)
    # Fold taps into the contraction dim: row index = tap*E + embed channel.
    w_fold = w_all.reshape(K_FOLD, NGF)
    return {
        "w_fold": w_fold.astype(jnp.bfloat16),                   # (128, 384)
        "b_all": b_all,                                          # (1, 384) f32
        "fc_w": fc_w.astype(jnp.bfloat16),                       # (384, 256)
        "fc_b": raw["fc_b"].reshape(1, OUTPUT_SIZE),             # (1, 256) f32
    }


def textcnn_reference(x, raw):
    """Pure-JAX f32 replica of the PyTorch TextCNN.forward (eval mode)."""
    b, s, e = x.shape
    feats = []
    for k in KERNEL_LIST:
        w = raw[f"conv_w{k}"][:, 0]                              # (F, k, E)
        l = s - k + 1
        win = jnp.stack([x[:, i:i + l, :] for i in range(k)], axis=2)   # (B, L, k, E)
        conv = jnp.einsum("blke,fke->blf", win, w,
                          precision=jax.lax.Precision.HIGHEST) + raw[f"conv_b{k}"]
        feats.append(jnp.max(jax.nn.relu(conv), axis=1))         # (B, F)
    feat = jnp.concatenate(feats, axis=-1)                       # (B, 300)
    return jnp.dot(feat, raw["fc_w"].T,
                   precision=jax.lax.Precision.HIGHEST) + raw["fc_b"]


if __name__ == "__main__":
    key = jax.random.PRNGKey(0)
    k_x, k_p = jax.random.split(key)
    batch, sent_len = 2, 16            # batch=2, sentence_max_size=16
    x = jax.random.normal(k_x, (batch, sent_len, EMBED_DIM), jnp.float32)
    raw = init_params(k_p)
    params = pack_params(raw)

    out = jax.block_until_ready(textcnn_forward(x, params))
    assert out.shape == (batch, OUTPUT_SIZE), out.shape
    assert bool(jnp.all(jnp.isfinite(out)))

    ref = textcnn_reference(x, raw)
    err = float(jnp.max(jnp.abs(out - ref)))
    scale = float(jnp.max(jnp.abs(ref))) + 1e-6
    assert err <= 0.05 * scale + 0.05, (err, scale)   # bf16-matmul tolerance
    print("KERNEL_OK")
</pallas_src>

<mosaic_0001>
module attributes {stable_mosaic.version = 11 : i64} {
  func.func @textcnn_kernel(%arg0: i32, %arg1: memref<2x16x32xf32, #tpu.memory_space<vmem>>, %arg2: memref<128x384xbf16, #tpu.memory_space<vmem>>, %arg3: memref<1x384xf32, #tpu.memory_space<vmem>>, %arg4: memref<16x384xf32, #tpu.memory_space<vmem>>, %arg5: memref<384x256xbf16, #tpu.memory_space<vmem>>, %arg6: memref<1x256xf32, #tpu.memory_space<vmem>>, %arg7: memref<2x256xf32, #tpu.memory_space<vmem>>) attributes {dimension_semantics = [#tpu.dimension_semantics<parallel>], iteration_bounds = array<i64: 1>, scalar_prefetch = 0 : i64, scratch_operands = 0 : i64, tpu.core_type = #tpu.core_type<tc>, window_params = [{transform_indices = @transform_0, window_bounds = array<i64: 2, 16, 32>}, {pipeline_mode = #tpu.pipeline_mode<synchronous>, transform_indices = @transform_1, window_bounds = array<i64: 128, 384>}, {pipeline_mode = #tpu.pipeline_mode<synchronous>, transform_indices = @transform_2, window_bounds = array<i64: 1, 384>}, {pipeline_mode = #tpu.pipeline_mode<synchronous>, transform_indices = @transform_3, window_bounds = array<i64: 16, 384>}, {pipeline_mode = #tpu.pipeline_mode<synchronous>, transform_indices = @transform_4, window_bounds = array<i64: 384, 256>}, {pipeline_mode = #tpu.pipeline_mode<synchronous>, transform_indices = @transform_5, window_bounds = array<i64: 1, 256>}, {transform_indices = @transform_6, window_bounds = array<i64: 2, 256>}]} {
    %c0 = arith.constant 0 : index
    %c0_0 = arith.constant 0 : index
    %c0_1 = arith.constant 0 : index
    %0 = vector.load %arg1[%c0, %c0_0, %c0_1] : memref<2x16x32xf32, #tpu.memory_space<vmem>>, vector<2x16x32xf32>
    %1 = vector.shape_cast %0 : vector<2x16x32xf32> to vector<32x32xf32>
    %c31_i32 = arith.constant 31 : i32
    %2 = tpu.dynamic_rotate %1 by %c31_i32 dim 0 : vector<32x32xf32>, i32 -> vector<32x32xf32>
    %c30_i32 = arith.constant 30 : i32
    %3 = tpu.dynamic_rotate %1 by %c30_i32 dim 0 : vector<32x32xf32>, i32 -> vector<32x32xf32>
    %c29_i32 = arith.constant 29 : i32
    %4 = tpu.dynamic_rotate %1 by %c29_i32 dim 0 : vector<32x32xf32>, i32 -> vector<32x32xf32>
    %5 = tpu.concatenate %1, %2, %3, %4 in 1 : vector<32x32xf32>, vector<32x32xf32>, vector<32x32xf32>, vector<32x32xf32> -> vector<32x128xf32>
    %6 = arith.truncf %5 : vector<32x128xf32> to vector<32x128xbf16>
    %c0_2 = arith.constant 0 : index
    %c0_3 = arith.constant 0 : index
    %7 = vector.load %arg2[%c0_2, %c0_3] : memref<128x384xbf16, #tpu.memory_space<vmem>>, vector<128x384xbf16>
    %cst = arith.constant dense<0.000000e+00> : vector<32x384xf32>
    %8 = tpu.matmul %6, %7, %cst {dimension_numbers = #tpu.dot_dimension_numbers<[1], [0], [0], [1], [0, 0, 1, 1], [], []>} : vector<32x128xbf16>, vector<128x384xbf16>, vector<32x384xf32> -> vector<32x384xf32>
    %9 = vector.shape_cast %8 : vector<32x384xf32> to vector<2x16x384xf32>
    %c0_4 = arith.constant 0 : index
    %c0_5 = arith.constant 0 : index
    %10 = vector.load %arg4[%c0_4, %c0_5] : memref<16x384xf32, #tpu.memory_space<vmem>>, vector<16x384xf32>
    %11 = vector.shape_cast %10 : vector<16x384xf32> to vector<1x16x384xf32>
    %12 = vector.broadcast %11 : vector<1x16x384xf32> to vector<2x16x384xf32>
    %13 = arith.addf %9, %12 : vector<2x16x384xf32>
    %cst_6 = arith.constant dense<0xFF800000> : vector<2x384xf32>
    %14 = vector.multi_reduction <maximumf>, %13, %cst_6 [1] : vector<2x16x384xf32> to vector<2x384xf32>
    %c0_7 = arith.constant 0 : index
    %c0_8 = arith.constant 0 : index
    %15 = vector.load %arg3[%c0_7, %c0_8] : memref<1x384xf32, #tpu.memory_space<vmem>>, vector<1x384xf32>
    %16 = vector.broadcast %15 : vector<1x384xf32> to vector<2x384xf32>
    %17 = arith.addf %14, %16 : vector<2x384xf32>
    %cst_9 = arith.constant 0.000000e+00 : f32
    %18 = vector.broadcast %cst_9 : f32 to vector<2x384xf32>
    %19 = arith.maximumf %17, %18 : vector<2x384xf32>
    %20 = arith.truncf %19 : vector<2x384xf32> to vector<2x384xbf16>
    %c0_10 = arith.constant 0 : index
    %c0_11 = arith.constant 0 : index
    %21 = vector.load %arg5[%c0_10, %c0_11] : memref<384x256xbf16, #tpu.memory_space<vmem>>, vector<384x256xbf16>
    %cst_12 = arith.constant dense<0.000000e+00> : vector<2x256xf32>
    %22 = tpu.matmul %20, %21, %cst_12 {dimension_numbers = #tpu.dot_dimension_numbers<[1], [0], [0], [1], [0, 0, 1, 1], [], []>} : vector<2x384xbf16>, vector<384x256xbf16>, vector<2x256xf32> -> vector<2x256xf32>
    %c0_13 = arith.constant 0 : index
    %c0_14 = arith.constant 0 : index
    %23 = vector.load %arg6[%c0_13, %c0_14] : memref<1x256xf32, #tpu.memory_space<vmem>>, vector<1x256xf32>
    %24 = vector.broadcast %23 : vector<1x256xf32> to vector<2x256xf32>
    %25 = arith.addf %22, %24 : vector<2x256xf32>
    %c0_15 = arith.constant 0 : index
    %c0_16 = arith.constant 0 : index
    %26 = vector.load %arg7[%c0_15, %c0_16] : memref<2x256xf32, #tpu.memory_space<vmem>>, vector<2x256xf32>
    tpu.vector_store %arg7[%c0_15, %c0_16], %25 {strides = array<i32>} : memref<2x256xf32, #tpu.memory_space<vmem>>, vector<2x256xf32>,
    return
  }
  func.func @transform_0(%arg0: i32) -> (i32, i32, i32) {
    %c0_i32 = arith.constant 0 : i32
    %c0_i32_0 = arith.constant 0 : i32
    %c0_i32_1 = arith.constant 0 : i32
    return %arg0, %c0_i32, %c0_i32_0 : i32, i32, i32
  }
  func.func @transform_1(%arg0: i32) -> (i32, i32) {
    %c0_i32 = arith.constant 0 : i32
    %c0_i32_0 = arith.constant 0 : i32
    %c0_i32_1 = arith.constant 0 : i32
    return %c0_i32, %c0_i32_0 : i32, i32
  }
  func.func @transform_2(%arg0: i32) -> (i32, i32) {
    %c0_i32 = arith.constant 0 : i32
    %c0_i32_0 = arith.constant 0 : i32
    %c0_i32_1 = arith.constant 0 : i32
    return %c0_i32, %c0_i32_0 : i32, i32
  }
  func.func @transform_3(%arg0: i32) -> (i32, i32) {
    %c0_i32 = arith.constant 0 : i32
    %c0_i32_0 = arith.constant 0 : i32
    %c0_i32_1 = arith.constant 0 : i32
    return %c0_i32, %c0_i32_0 : i32, i32
  }
  func.func @transform_4(%arg0: i32) -> (i32, i32) {
    %c0_i32 = arith.constant 0 : i32
    %c0_i32_0 = arith.constant 0 : i32
    %c0_i32_1 = arith.constant 0 : i32
    return %c0_i32, %c0_i32_0 : i32, i32
  }
  func.func @transform_5(%arg0: i32) -> (i32, i32) {
    %c0_i32 = arith.constant 0 : i32
    %c0_i32_0 = arith.constant 0 : i32
    %c0_i32_1 = arith.constant 0 : i32
    return %c0_i32, %c0_i32_0 : i32, i32
  }
  func.func @transform_6(%arg0: i32) -> (i32, i32) {
    %c0_i32 = arith.constant 0 : i32
    %c0_i32_0 = arith.constant 0 : i32
    return %arg0, %c0_i32 : i32, i32
  }
}

</mosaic_0001>

<bundles_post_ra>
// kernel: tpu_custom_call.1
= control target key start
LH: loop header
LB: loop body
LE: loop exit
PB: predicated region body
PF: predicated region fallthrough
CT: control target
= control target key end

     0   :  { %11 = vsyncpa [#allocation3], 0  ;;  %s1484_s0 = inlined_call_operand.hbm [shape: f32[2,16,32], index: 0, kind: input, shape index: {}]   ;;  %s1485_s1 = inlined_call_operand.hbm [shape: bf16[128,384], index: 1, kind: input, shape index: {}]   ;;  %s1486_s2 = inlined_call_operand.vmem [shape: f32[1,384], index: 2, kind: input, shape index: {}]   ;;  %s1487_s3 = inlined_call_operand.hbm [shape: f32[16,384], index: 3, kind: input, shape index: {}]   ;;  %s1488_s4 = inlined_call_operand.hbm [shape: bf16[384,256], index: 4, kind: input, shape index: {}]   ;;  %s1489_s5 = inlined_call_operand.vmem [shape: f32[1,256], index: 5, kind: input, shape index: {}]   ;;  %s1490_s6 = inlined_call_operand.hbm [shape: f32[2,256], index: 6, kind: output, shape index: {}]  }
   0x1   :  { %12 = vsyncpa [#allocation6], 0 }
   0x2   :  { %13 = vsyncpa [#allocation9], 0 }
   0x3   :  { %14 = vsyncpa [#allocation4], 0  ;;  %s1331_s21 = smov [#allocation5]  }
   0x4   :  { %s32_s22 = sshll.u32 %s1331_s21, 4  ;;  %s33_s22 = int_to_ptr.vmem [resolvable:$true] %s32_s22 }
   0x5   :  { %s1231_s23 = scalar_lea.vmem %s33_s22, 3072  ;;  %p1236_p1 = scmp.lt.s32.totalorder %s33_s22, %s33_s22 }
   0x6   :  { %p1232_p0 = scmp.ne.s32.totalorder %s33_s22, %s1231_s23  ;;  %p1237_p2 = scmp.lt.s32.totalorder %s1231_s23, %s1231_s23 }
   0x8   :  { %p1238_p3 = por %p1237_p2, %p1236_p1 }
   0xa   :  { %p1239_p4 = pnand %p1238_p3, %p1232_p0 }
   0xc   :  { %1242 = shalt.err (!%p1239_p4)
}
   0xd   :  { %s1332_s24 = smov 192   ;;  %s1333_s25 = smov 12  }
   0xe   :  { %38 = dma.hbm_to_vmem [thread:$0]  %s1485_s1, 3072, %s33_s22, [#allocation6], %s1332_s24, %s1332_s24, %s1333_s25  }
   0xf   :  { %s1334_s28 = smov [#allocation2]  }
  0x10   :  { %s20_s29 = sshll.u32 %s1334_s28, 4  ;;  %s21_s29 = int_to_ptr.vmem [resolvable:$true] %s20_s29 }
  0x11   :  { %s1251_s30 = scalar_lea.vmem %s21_s29, 512  ;;  %p1256_p6 = scmp.lt.s32.totalorder %s21_s29, %s21_s29 }
  0x12   :  { %p1252_p5 = scmp.ne.s32.totalorder %s21_s29, %s1251_s30  ;;  %p1257_p7 = scmp.lt.s32.totalorder %s1251_s30, %s1251_s30 }
  0x14   :  { %p1258_p8 = por %p1257_p7, %p1256_p6 }
  0x16   :  { %p1259_p9 = pnand %p1258_p8, %p1252_p5 }
  0x18   :  { %1262 = shalt.err (!%p1259_p9)
}
  0x19   :  { %s1335_s7 = smov 128   ;;  %s1336_s8 = smov 8  }
  0x1a   :  { %26 = dma.hbm_to_vmem [thread:$0]  %s1484_s0, 512, %s21_s29, [#allocation3], %s1335_s7, %s1335_s7, %s1336_s8  }
  0x1b   :  { %s1337_s11 = smov [#allocation7]  }
  0x1c   :  { %s46_s12 = sshll.u32 %s1337_s11, 4  ;;  %s47_s12 = int_to_ptr.vmem [resolvable:$true] %s46_s12 }
  0x1d   :  { %s1271_s1 = scalar_lea.vmem %s47_s12, 768  ;;  %p1276_p11 = scmp.lt.s32.totalorder %s47_s12, %s47_s12 }
  0x1e   :  { %p1272_p10 = scmp.ne.s32.totalorder %s47_s12, %s1271_s1  ;;  %p1277_p12 = scmp.lt.s32.totalorder %s1271_s1, %s1271_s1 }
  0x20   :  { %p1278_p13 = por %p1277_p12, %p1276_p11 }
  0x22   :  { %p1279_p0 = pnand %p1278_p13, %p1272_p10 }
  0x24   :  { %1282 = shalt.err (!%p1279_p0)
}
  0x25   :  { %s1338_s13 = smov 384   ;;  %s1339_s14 = smov 24  }
  0x26   :  { %52 = dma.hbm_to_vmem [thread:$0]  %s1487_s3, 768, %s47_s12, [#allocation6], %s1338_s13, %s1338_s13, %s1339_s14  }
  0x27   :  { %s1340_s17 = smov [#allocation8]  }
  0x28   :  { %s58_s18 = sshll.u32 %s1340_s17, 4  ;;  %s59_s18 = int_to_ptr.vmem [resolvable:$true] %s58_s18 }
  0x29   :  { %s1291_s0 = scalar_lea.vmem %s59_s18, 6144  ;;  %p1296_p2 = scmp.lt.s32.totalorder %s59_s18, %s59_s18 }
  0x2a   :  { %p1292_p1 = scmp.ne.s32.totalorder %s59_s18, %s1291_s0  ;;  %p1297_p3 = scmp.lt.s32.totalorder %s1291_s0, %s1291_s0 }
  0x2c   :  { %p1298_p4 = por %p1297_p3, %p1296_p2 }
  0x2e   :  { %p1299_p5 = pnand %p1298_p4, %p1292_p1 }
  0x30   :  { %1302 = shalt.err (!%p1299_p5)
}
  0x31   :  { %64 = dma.hbm_to_vmem [thread:$0]  %s1488_s4, 6144, %s59_s18, [#allocation9], %s1335_s7, %s1335_s7, %s1336_s8  }
  0x32   :  { %1323 = dma.done.wait [#allocation3], 512  }
  0x33   :  { %1324 = vsyncadd [#allocation3], 4294966784 }
  0x34   :  { %1325 = dma.done.wait [#allocation6], 3840  }
  0x35   :  { %1326 = vsyncadd [#allocation6], 4294963456 }
  0x36   :  { %1327 = dma.done.wait [#allocation9], 6144  }
  0x37   :  { %1328 = vsyncadd [#allocation9], 4294961152  ;;  %v88_v0 = vlaneseq  ;;  %v1395_v2 = vld [vmem:[#allocation2] sm:$0xff]  ;;  %v1397_v3 = vld [vmem:[#allocation2 + $0x8] sm:$0xff]  ;;  %s1341_s3 = smov 32   ;;  %s1342_s4 = smov 96  }
  0x38   :  { %v1399_v4 = vld [vmem:[#allocation2 + $0x10] sm:$0xff]  ;;  %v84_v5 = vrot.slane %v1395_v2, 1  ;;  %v85_v6 = vrot.slane %v1397_v3, 1  ;;  %v104_v8 = vrot.slane %v1395_v2, 3  ;;  %v1408_v9 = vld [vmem:[#allocation2 + $0x18] sm:$0xff]  ;;  %v105_v10 = vrot.slane %v1397_v3, 3 }
  0x39   :  { %v1393_v1 = vshrl.u32 %v88_v0, 7  ;;  %v86_v7 = vrot.slane %v1399_v4, 1  ;;  %v106_v11 = vrot.slane %v1399_v4, 3  ;;  %v95_v12 = vrot.slane %v1395_v2, 2  ;;  %v1119_v18 = vld [vmem:[#allocation5 + $0xac] ss:$12 sps:$4 sm:$0xff]  }
  0x3a   :  { %v96_v13 = vrot.slane %v1397_v3, 2  ;;  %v97_v16 = vrot.slane %v1399_v4, 2  ;;  %v87_v17 = vrot.slane %v1408_v9, 1  ;;  %v1121_v19 = vld [vmem:[#allocation5 + $0xa8] ss:$12 sps:$4 sm:$0xff]   ;;  %338 = vmatprep.subr.bf16.mxu0 %v1119_v18  ;;  %v98_v31 = vrot.slane %v1408_v9, 2 }
  0x3b   :  { %vm90_vm0 = vcmp.lt.s32.totalorder %v1393_v1, 7  ;;  %vm108_vm1 = vcmp.lt.s32.totalorder %v1393_v1, 5  ;;  %vm99_vm2 = vcmp.lt.s32.totalorder %v1393_v1, 6  ;;  %v1122_v24 = vld [vmem:[#allocation5 + $0x94] ss:$12 sps:$4 sm:$0xff]   ;;  %v107_v32 = vrot.slane %v1408_v9, 3  ;;  %339 = vmatpush1.bf16.msra.mxu0 %v1121_v19 }
  0x3c   :  { %v92_v14 = vsel %vm90_vm0, %v85_v6, %v86_v7  ;;  %v93_v15 = vsel %vm90_vm0, %v84_v5, %v85_v6  ;;  %v110_v21 = vsel %vm108_vm1, %v105_v10, %v106_v11  ;;  %v111_v22 = vsel %vm108_vm1, %v104_v8, %v105_v10  ;;  %v1124_v29 = vld [vmem:[#allocation5 + $0xb0] ss:$12 sps:$4 sm:$0xff]   ;;  %340 = vmatprep.subr.bf16.mxu0 %v1122_v24  ;;  %v1128_v40 = vld [vmem:[#allocation5 + $0x98] ss:$12 sps:$4 sm:$0xff]   ;;  %s1343_s21 = smov 64   ;;  %s1345_s25 = smov [#allocation10]  }
  0x3d   :  { %v1089_v20 = vpack.i.bf16 %v92_v14, %v93_v15  ;;  %v102_v23 = vsel %vm99_vm2, %v95_v12, %v96_v13  ;;  %v1099_v25 = vpack.i.bf16 %v110_v21, %v111_v22  ;;  %v101_v26 = vsel %vm99_vm2, %v96_v13, %v97_v16  ;;  %v1125_v33 = vld [vmem:[#allocation5 + $0x90] ss:$12 sps:$4 sm:$0xff]   ;;  %1054 = vmatprep.subr.bf16.mxu1 %v1124_v29  ;;  %v1129_v42 = vld [vmem:[#allocation5 + $0x78] ss:$12 sps:$4 sm:$0xff]   ;;  %v1132_v45 = vld [vmem:[#allocation5 + $0x80] ss:$12 sps:$4 sm:$0xff]  }
  0x3e   :  { %v91_v27 = vsel %vm90_vm0, %v86_v7, %v87_v17  ;;  %v94_v28 = vsel %vm90_vm0, %v87_v17, %v84_v5  ;;  %v1094_v30 = vpack.i.bf16 %v101_v26, %v102_v23  ;;  %v1126_v35 = vld [vmem:[#allocation5 + $0x7c] ss:$12 sps:$4 sm:$0xff]   ;;  %v100_v36 = vsel %vm99_vm2, %v97_v16, %v98_v31  ;;  %1055 = vmatpush3.bf16.msra.mxu1 %v1124_v29  ;;  %v1130_v44 = vld [vmem:[#allocation5 + $0x64] ss:$12 sps:$4 sm:$0xff]   ;;  %v1133_v47 = vld [vmem:[#allocation5 + $0x60] ss:$12 sps:$4 sm:$0xff]  }
  0x3f   :  { %1090 = vrot.lane.b32.xlu0 %v1089_v20, %s1341_s3  ;;  %1100 = vrot.lane.b32.xlu1 %v1099_v25, %s1342_s4  ;;  %v1104_v34 = vpack.i.bf16 %v94_v28, %v91_v27  ;;  %v103_v37 = vsel %vm99_vm2, %v98_v31, %v95_v12  ;;  %v109_v38 = vsel %vm108_vm1, %v106_v11, %v107_v32  ;;  %v1344_v46 = vmov 0   ;;  %v1136_v48 = vld [vmem:[#allocation5 + $0x68] ss:$12 sps:$4 sm:$0xff]   ;;  %v1134_v49 = vld [vmem:[#allocation5 + $0x4c] ss:$12 sps:$4 sm:$0xff]   ;;  %s960_s26 = sshll.u32 %s1345_s25, 4  ;;  %s961_s26 = int_to_ptr.vmem [resolvable:$true] %s960_s26 }
  0x40   :  { %v112_v39 = vsel %vm108_vm1, %v107_v32, %v104_v8  ;;  %v1109_v41 = vpack.i.bf16 %v103_v37, %v100_v36  ;;  %341 = vmatpush1.bf16.msra.mxu0 %v1125_v33  ;;  %1056 = vmatprep.subr.bf16.mxu1 %v1128_v40  ;;  %v1137_v50 = vld [vmem:[#allocation5 + $0x48] ss:$12 sps:$4 sm:$0xff]   ;;  %v1140_v51 = vld [vmem:[#allocation5 + $0x50] ss:$12 sps:$4 sm:$0xff]   ;;  %v1144_v54 = vld [vmem:[#allocation5 + $0x38] ss:$12 sps:$4 sm:$0xff]   ;;  %p1308_p7 = scmp.lt.s32.totalorder %s961_s26, %s961_s26 }
  0x41   :  { %v1114_v43 = vpack.i.bf16 %v112_v39, %v109_v38  ;;  %342 = vmatprep.subr.bf16.mxu0 %v1126_v35  ;;  %370 = vmatprep.mubr.bf16.mxu0 %v1344_v46  ;;  %v1138_v52 = vld [vmem:[#allocation5 + $0x34] ss:$12 sps:$4 sm:$0xff]   ;;  %v1141_v53 = vld [vmem:[#allocation5 + $0x30] ss:$12 sps:$4 sm:$0xff]   ;;  %v1145_v56 = vld [vmem:[#allocation5 + $0x18] ss:$12 sps:$4 sm:$0xff]  }
  0x42   :  { %1057 = vmatpush3.bf16.msra.mxu1 %v1128_v40  ;;  %v1142_v55 = vld [vmem:[#allocation5 + $0x1c] ss:$12 sps:$4 sm:$0xff]   ;;  %v1148_v57 = vld [vmem:[#allocation5 + $0x20] ss:$12 sps:$4 sm:$0xff]   ;;  %v1146_v58 = vld [vmem:[#allocation5 + $0x4] ss:$12 sps:$4 sm:$0xff]  }
  0x43   :  { %1095 = vrot.lane.b32.xlu0 %v1094_v30, %s1343_s21  ;;  %1105 = vrot.lane.b32.xlu1 %v1104_v34, %s1341_s3  ;;  %v1149_v59 = vld [vmem:[#allocation5] ss:$12 sps:$4 sm:$0xff]   ;;  %v1150_v60 = vld [vmem:[#allocation5 + $0x8] ss:$12 sps:$4 sm:$0xff]   ;;  %vm161_vm3 = vcmask 261120   ;;  %vm166_vm4 = vcmask 523264  }
  0x44   :  { %343 = vmatpush1.bf16.msra.mxu0 %v1129_v42  ;;  %1058 = vmatprep.subr.bf16.mxu1 %v1132_v45  ;;  %v1153_v61 = vld [vmem:[#allocation8 + $0x74] ss:$8 sps:$4 sm:$0xff]   ;;  %vm171_vm5 = vcmask 785408   ;;  %v1151_v23 = vld [vmem:[#allocation8 + $0x70] ss:$8 sps:$4 sm:$0xff]   ;;  %vm608_vm6 = vcmask 1041409  }
  0x45   :  { %344 = vmatprep.subr.bf16.mxu0 %v1130_v44  ;;  %v1156_v27 = vld [vmem:[#allocation8 + $0x64] ss:$8 sps:$4 sm:$0xff]   ;;  %v1154_v32 = vld [vmem:[#allocation8 + $0x60] ss:$8 sps:$4 sm:$0xff]   ;;  %v1159_v34 = vld [vmem:[#allocation8 + $0x54] ss:$8 sps:$4 sm:$0xff]  }
  0x46   :  { %1059 = vmatpush3.bf16.msra.mxu1 %v1132_v45  ;;  %v1157_v35 = vld [vmem:[#allocation8 + $0x50] ss:$8 sps:$4 sm:$0xff]   ;;  %v1162_v36 = vld [vmem:[#allocation8 + $0x44] ss:$8 sps:$4 sm:$0xff]   ;;  %v1160_v37 = vld [vmem:[#allocation8 + $0x40] ss:$8 sps:$4 sm:$0xff]  }
  0x47   :  { %1110 = vrot.lane.b32.xlu0 %v1109_v41, %s1343_s21  ;;  %1115 = vrot.lane.b32.xlu1 %v1114_v43, %s1342_s4  ;;  %v1165_v38 = vld [vmem:[#allocation8 + $0x34] ss:$8 sps:$4 sm:$0xff]   ;;  %v1163_v39 = vld [vmem:[#allocation8 + $0x30] ss:$8 sps:$4 sm:$0xff]   ;;  %v1168_v40 = vld [vmem:[#allocation8 + $0x24] ss:$8 sps:$4 sm:$0xff]  }
  0x48   :  { %345 = vmatpush1.bf16.msra.mxu0 %v1133_v47  ;;  %1060 = vmatprep.subr.bf16.mxu1 %v1136_v48  ;;  %v1166_v41 = vld [vmem:[#allocation8 + $0x20] ss:$8 sps:$4 sm:$0xff]   ;;  %v1171_v42 = vld [vmem:[#allocation8 + $0x14] ss:$8 sps:$4 sm:$0xff]   ;;  %v1169_v43 = vld [vmem:[#allocation8 + $0x10] ss:$8 sps:$4 sm:$0xff]  }
  0x49   :  { %346 = vmatprep.subr.bf16.mxu0 %v1134_v49  ;;  %v1174_v44 = vld [vmem:[#allocation8 + $0x174] ss:$8 sps:$4 sm:$0xff]   ;;  %v1172_v45 = vld [vmem:[#allocation8 + $0x170] ss:$8 sps:$4 sm:$0xff]   ;;  %v1175_v47 = vld [vmem:[#allocation8] ss:$8 sps:$4 sm:$0xff]  }
  0x4a   :  { %1061 = vmatpush3.bf16.msra.mxu1 %v1136_v48  ;;  %v1180_v48 = vld [vmem:[#allocation8 + $0x164] ss:$8 sps:$4 sm:$0xff]   ;;  %v1178_v49 = vld [vmem:[#allocation8 + $0x160] ss:$8 sps:$4 sm:$0xff]  }
  0x4b   :  { %1062 = vmatprep.subr.bf16.mxu1 %v1140_v51 }
  0x4c   :  { %347 = vmatpush1.bf16.msra.mxu0 %v1137_v50  ;;  %v1183_v50 = vld [vmem:[#allocation8 + $0xf4] ss:$8 sps:$4 sm:$0xff]  }
  0x4d   :  { %348 = vmatprep.subr.bf16.mxu0 %v1138_v52  ;;  %v1186_v52 = vld [vmem:[#allocation8 + $0x154] ss:$8 sps:$4 sm:$0xff]  }
  0x4e   :  { %1063 = vmatpush3.bf16.msra.mxu1 %v1140_v51  ;;  %v1181_v51 = vld [vmem:[#allocation8 + $0xf0] ss:$8 sps:$4 sm:$0xff]  }
  0x4f   :  { %1064 = vmatprep.subr.bf16.mxu1 %v1144_v54 }
  0x50   :  { %349 = vmatpush1.bf16.msra.mxu0 %v1141_v53  ;;  %v1184_v53 = vld [vmem:[#allocation8 + $0x150] ss:$8 sps:$4 sm:$0xff]  }
  0x51   :  { %350 = vmatprep.subr.bf16.mxu0 %v1142_v55  ;;  %v1187_v55 = vld [vmem:[#allocation8 + $0xe0] ss:$8 sps:$4 sm:$0xff]  }
  0x52   :  { %1065 = vmatpush3.bf16.msra.mxu1 %v1144_v54  ;;  %v1189_v54 = vld [vmem:[#allocation8 + $0xe4] ss:$8 sps:$4 sm:$0xff]  }
  0x53   :  { %1066 = vmatprep.subr.bf16.mxu1 %v1148_v57 }
  0x54   :  { %351 = vmatpush1.bf16.msra.mxu0 %v1145_v56  ;;  %v1192_v56 = vld [vmem:[#allocation8 + $0x144] ss:$8 sps:$4 sm:$0xff]  }
  0x55   :  { %352 = vmatprep.subr.bf16.mxu0 %v1146_v58  ;;  %v1195_v58 = vld [vmem:[#allocation8 + $0xd4] ss:$8 sps:$4 sm:$0xff]  }
  0x56   :  { %1067 = vmatpush3.bf16.msra.mxu1 %v1148_v57  ;;  %v1190_v57 = vld [vmem:[#allocation8 + $0x140] ss:$8 sps:$4 sm:$0xff]  }
  0x57   :  { %1068 = vmatprep.subr.bf16.mxu1 %v1150_v60 }
  0x58   :  { %353 = vmatpush1.bf16.msra.mxu0 %v1149_v59  ;;  %v1193_v59 = vld [vmem:[#allocation8 + $0xd0] ss:$8 sps:$4 sm:$0xff]  }
  0x59   :  { %860 = vmatprep.subr.bf16.mxu0 %v1153_v61  ;;  %v1196_v61 = vld [vmem:[#allocation8 + $0x130] ss:$8 sps:$4 sm:$0xff]  }
  0x5a   :  { %1069 = vmatpush3.bf16.msra.mxu1 %v1150_v60  ;;  %v1198_v60 = vld [vmem:[#allocation8 + $0x134] ss:$8 sps:$4 sm:$0xff]  }
  0x5b   :  { %901 = vmatprep.subr.bf16.mxu1 %v1174_v44 }
  0xb1   :  { %v1091_v62 = vpop.permute.xlu0 %1090  ;;  %v1101_v63 = vpop.permute.xlu1 %1100 }
  0xb2   :  { %v1093_v0 = vunpack.i.h.bf16 %v1091_v62  ;;  %v1092_v5 = vunpack.i.l.bf16 %v1091_v62  ;;  %v1103_v6 = vunpack.i.h.bf16 %v1101_v63  ;;  %v1102_v7 = vunpack.i.l.bf16 %v1101_v63  ;;  %v1201_v62 = vld [vmem:[#allocation8 + $0xc4] ss:$8 sps:$4 sm:$0xff]   ;;  %v1199_v63 = vld [vmem:[#allocation8 + $0xc0] ss:$8 sps:$4 sm:$0xff]  }
  0xb4   :  { %v163_v13 = vsel %vm161_vm3, %v1397_v3, %v1093_v0  ;;  %v162_v14 = vsel %vm161_vm3, %v1395_v2, %v1092_v5  ;;  %v1204_v0 = vld [vmem:[#allocation8 + $0x124] ss:$8 sps:$4 sm:$0xff]   ;;  %v1202_v5 = vld [vmem:[#allocation8 + $0x120] ss:$8 sps:$4 sm:$0xff]  }
  0xb5   :  { %v1096_v8 = vpop.permute.xlu0 %1095  ;;  %v1106_v12 = vpop.permute.xlu1 %1105 }
  0xb6   :  { %v1098_v10 = vunpack.i.h.bf16 %v1096_v8  ;;  %v1097_v11 = vunpack.i.l.bf16 %v1096_v8  ;;  %v1108_v15 = vunpack.i.h.bf16 %v1106_v12  ;;  %v1107_v16 = vunpack.i.l.bf16 %v1106_v12  ;;  %v1210_v8 = vld [vmem:[#allocation8 + $0x114] ss:$8 sps:$4 sm:$0xff]   ;;  %v1211_v12 = vld [vmem:[#allocation8 + $0xa0] ss:$8 sps:$4 sm:$0xff]  }
  0xb8   :  { %v167_v17 = vsel %vm166_vm4, %v162_v14, %v1097_v11  ;;  %v168_v18 = vsel %vm166_vm4, %v163_v13, %v1098_v10  ;;  %v165_v19 = vsel %vm161_vm3, %v1408_v9, %v1108_v15  ;;  %v164_v20 = vsel %vm161_vm3, %v1399_v4, %v1107_v16  ;;  %v1208_v10 = vld [vmem:[#allocation8 + $0x110] ss:$8 sps:$4 sm:$0xff]   ;;  %v1213_v11 = vld [vmem:[#allocation8 + $0xa4] ss:$8 sps:$4 sm:$0xff]   ;;  %v1214_v14 = vld [vmem:[#allocation8 + $0x100] ss:$8 sps:$4 sm:$0xff]  }
  0xb9   :  { %v1111_v21 = vpop.permute.xlu0 %1110  ;;  %v172_v22 = vsel %vm171_vm5, %v167_v17, %v1102_v7  ;;  %v173_v3 = vsel %vm171_vm5, %v168_v18, %v1103_v6  ;;  %v1116_v25 = vpop.permute.xlu1 %1115  ;;  %v1207_v6 = vld [vmem:[#allocation8 + $0xb4] ss:$8 sps:$4 sm:$0xff]   ;;  %v1205_v7 = vld [vmem:[#allocation8 + $0xb0] ss:$8 sps:$4 sm:$0xff]   ;;  %v1216_v13 = vld [vmem:[#allocation8 + $0x104] ss:$8 sps:$4 sm:$0xff]  }
  0xba   :  { %v1113_v24 = vunpack.i.h.bf16 %v1111_v21  ;;  %v1112_v2 = vunpack.i.l.bf16 %v1111_v21  ;;  %v176_v26 = vpack.c.bf16 %v173_v3, %v172_v22  ;;  %v1118_v28 = vunpack.i.h.bf16 %v1116_v25  ;;  %v1219_v15 = vld [vmem:[#allocation8 + $0x94] ss:$8 sps:$4 sm:$0xff]   ;;  %v1217_v16 = vld [vmem:[#allocation8 + $0x90] ss:$8 sps:$4 sm:$0xff]   ;;  %v1220_v17 = vld [vmem:[#allocation8 + $0x80] ss:$8 sps:$4 sm:$0xff]  }
  0xbb   :  { %v1117_v29 = vunpack.i.l.bf16 %v1116_v25  ;;  %v1222_v18 = vld [vmem:[#allocation8 + $0x84] ss:$8 sps:$4 sm:$0xff]   ;;  %v441_v3 = vld [vmem:[#allocation7 + $0x8] sm:$0xff] }
  0xbc   :  { %v170_v30 = vsel %vm166_vm4, %v165_v19, %v1113_v24  ;;  %v169_v9 = vsel %vm166_vm4, %v164_v20, %v1112_v2  ;;  %371 = vmatmul.mubr.bf16.vlgmr.msra.gmra.mxu0 %v176_v26  ;;  %1070 = vmatprep.mubr.bf16.mxu1 %v176_v26  ;;  %v440_v20 = vld [vmem:[#allocation7] sm:$0xff]  ;;  %v443_v22 = vld [vmem:[#allocation7 + $0x18] sm:$0xff] }
  0xbd   :  { %v174_v4 = vsel %vm171_vm5, %v169_v9, %v1117_v29  ;;  %v175_v31 = vsel %vm171_vm5, %v170_v30, %v1118_v28  ;;  %380 = vmatprep.mubr.bf16.mxu0 %v1344_v46  ;;  %861 = vmatpush1.bf16.msra.mxu0 %v1151_v23  ;;  %v444_v2 = vld [vmem:[#allocation7 + $0x20] sm:$0xff]  ;;  %v445_v30 = vld [vmem:[#allocation7 + $0x28] sm:$0xff] }
  0xbe   :  { %v177_v33 = vpack.c.bf16 %v175_v31, %v174_v4  ;;  %862 = vmatprep.subr.bf16.mxu0 %v1156_v27  ;;  %v442_v27 = vld [vmem:[#allocation7 + $0x10] sm:$0xff] }
  0xc0   :  { %1071 = vmatmul.mubr.bf16.vlgmr.msra.gmra.mxu1 %v177_v33 }
  0xc1   :  { %863 = vmatpush1.bf16.msra.mxu0 %v1154_v32  ;;  %933 = vmatprep.mubr.bf16.mxu1 %v1344_v46  ;;  %v1177_v46 = vld [vmem:[#allocation8 + $0x4] ss:$8 sps:$4 sm:$0xff]  }
  0xc2   :  { %864 = vmatprep.subr.bf16.mxu0 %v1159_v34  ;;  %902 = vmatpush1.bf16.msra.mxu1 %v1172_v45 }
  0xc3   :  { %903 = vmatprep.subr.bf16.mxu1 %v1180_v48 }
  0xc4   :  { %381 = vmatmul.mubr.bf16.gmra.mxu0 %v177_v33 }
  0xc5   :  { %865 = vmatpush1.bf16.msra.mxu0 %v1157_v35 }
  0xc6   :  { %866 = vmatprep.subr.bf16.mxu0 %v1162_v36  ;;  %904 = vmatpush1.bf16.msra.mxu1 %v1178_v49 }
  0xc7   :  { %905 = vmatprep.subr.bf16.mxu1 %v1186_v52 }
  0xc9   :  { %867 = vmatpush1.bf16.msra.mxu0 %v1160_v37 }
  0xca   :  { %868 = vmatprep.subr.bf16.mxu0 %v1165_v38  ;;  %906 = vmatpush1.bf16.msra.mxu1 %v1184_v53 }
  0xcb   :  { %907 = vmatprep.subr.bf16.mxu1 %v1192_v56 }
  0xcd   :  { %869 = vmatpush1.bf16.msra.mxu0 %v1163_v39 }
  0xce   :  { %870 = vmatprep.subr.bf16.mxu0 %v1168_v40  ;;  %908 = vmatpush1.bf16.msra.mxu1 %v1190_v57 }
  0xcf   :  { %909 = vmatprep.subr.bf16.mxu1 %v1198_v60 }
  0xd1   :  { %871 = vmatpush1.bf16.msra.mxu0 %v1166_v41 }
  0xd2   :  { %872 = vmatprep.subr.bf16.mxu0 %v1171_v42  ;;  %910 = vmatpush1.bf16.msra.mxu1 %v1196_v61 }
  0xd3   :  { %911 = vmatprep.subr.bf16.mxu1 %v1204_v0 }
  0xd5   :  { %873 = vmatpush1.bf16.msra.mxu0 %v1169_v43 }
  0xd6   :  { %874 = vmatprep.subr.bf16.mxu0 %v1177_v46  ;;  %912 = vmatpush1.bf16.msra.mxu1 %v1202_v5 }
  0xd7   :  { %913 = vmatprep.subr.bf16.mxu1 %v1210_v8 }
  0xd9   :  { %875 = vmatpush1.bf16.msra.mxu0 %v1175_v47 }
  0xda   :  { %876 = vmatprep.subr.bf16.mxu0 %v1183_v50  ;;  %914 = vmatpush1.bf16.msra.mxu1 %v1208_v10 }
  0xdb   :  { %915 = vmatprep.subr.bf16.mxu1 %v1216_v13 }
  0xdd   :  { %877 = vmatpush2.bf16.msra.mxu0 %v1181_v51 }
  0xde   :  { %878 = vmatprep.subr.bf16.mxu0 %v1189_v54  ;;  %916 = vmatpush1.bf16.msra.mxu1 %v1214_v14 }
  0xe1   :  { %879 = vmatpush2.bf16.msra.mxu0 %v1187_v55 }
  0xe2   :  { %880 = vmatprep.subr.bf16.mxu0 %v1195_v58 }
  0xe5   :  { %881 = vmatpush2.bf16.msra.mxu0 %v1193_v59 }
  0xe6   :  { %882 = vmatprep.subr.bf16.mxu0 %v1201_v62  ;;  %v512_v62 = vsub.s32 2, %v1393_v1 }
  0xe9   :  { %883 = vmatpush2.bf16.msra.mxu0 %v1199_v63 }
  0xea   :  { %884 = vmatprep.subr.bf16.mxu0 %v1207_v6 }
  0xed   :  { %885 = vmatpush2.bf16.msra.mxu0 %v1205_v7  ;;  %v504_v7 = vsub.s32 0, %v1393_v1 }
  0xee   :  { %886 = vmatprep.subr.bf16.mxu0 %v1213_v11  ;;  %v500_v11 = vld [vmem:[%s1486_s2] sm:$0x7] }
  0xf1   :  { %887 = vmatpush2.bf16.msra.mxu0 %v1211_v12 }
  0xf2   :  { %888 = vmatprep.subr.bf16.mxu0 %v1219_v15  ;;  %v508_v15 = vsub.s32 1, %v1393_v1 }
  0xf5   :  { %889 = vmatpush2.bf16.msra.mxu0 %v1217_v16 }
  0xf6   :  { %890 = vmatprep.subr.bf16.mxu0 %v1222_v18 }
  0xf9   :  { %891 = vmatpush2.bf16.msra.mxu0 %v1220_v17  ;;  %v513_v17 = vrot.slane %v500_v11, %v512_v62 }
 0x17c   :  { %v372_v19 = vpop.f32.mrf.mxu0 }
 0x17d   :  { %v446_v25 = vadd.f32 %v440_v20, %v372_v19 }
 0x17e   :  { %v374_v21 = vpop.f32.mrf.mxu0 }
 0x17f   :  { %v447_v9 = vadd.f32 %v441_v3, %v374_v21 }
 0x180   :  { %v376_v23 = vpop.f32.mrf.mxu0  ;;  %v1072_v24 = vpop.f32.mrf.mxu1 }
 0x181   :  { %v449_v26 = vadd.f32 %v443_v22, %v376_v23  ;;  %v454_v35 = vadd.f32 %v1072_v24, %v442_v27 }
 0x182   :  { %v378_v28 = vpop.f32.mrf.mxu0  ;;  %v425_v29 = vpop.f32.mrf.mxu1 }
 0x183   :  { %v458_v4 = vmax.f32 %v446_v25, %v449_v26  ;;  %v450_v31 = vadd.f32 %v444_v2, %v378_v28  ;;  %v448_v43 = vadd.f32 %v442_v27, %v425_v29  ;;  %v509_v26 = vrot.slane %v500_v11, %v508_v15 }
 0x184   :  { %v382_v32 = vpop.f32.mrf.mxu0  ;;  %v1073_v33 = vpop.f32.mrf.mxu1 }
 0x185   :  { %v459_v34 = vrot.slane %v458_v4, 4  ;;  %v465_v36 = vmax.f32 %v447_v9, %v450_v31  ;;  %v457_v37 = vadd.f32 %v1073_v33, %v445_v30  ;;  %v452_v44 = vadd.f32 %v440_v20, %v382_v32 }
 0x186   :  { %v384_v38 = vpop.f32.mrf.mxu0  ;;  %v428_v39 = vpop.f32.mrf.mxu1 }
 0x187   :  { %v460_v40 = vmax.f32 %v458_v4, %v459_v34  ;;  %v466_v41 = vrot.slane %v465_v36, 4  ;;  %v493_v42 = vmax.f32 %v454_v35, %v457_v37  ;;  %v451_v45 = vadd.f32 %v445_v30, %v428_v39 }
 0x188   :  { %v386_v46 = vpop.f32.mrf.mxu0  ;;  %v453_v57 = vadd.f32 %v441_v3, %v384_v38 }
 0x189   :  { %v461_v47 = vrot.slane %v460_v40, 2  ;;  %v467_v48 = vmax.f32 %v465_v36, %v466_v41  ;;  %v494_v49 = vrot.slane %v493_v42, 4  ;;  %v455_v50 = vadd.f32 %v443_v22, %v386_v46 }
 0x18a   :  { %v472_v51 = vmax.f32 %v448_v43, %v451_v45  ;;  %v388_v52 = vpop.f32.mrf.mxu0  ;;  %v505_v22 = vrot.slane %v500_v11, %v504_v7 }
 0x18b   :  { %v462_v53 = vmax.f32 %v460_v40, %v461_v47  ;;  %v468_v54 = vrot.slane %v467_v48, 2  ;;  %v495_v55 = vmax.f32 %v493_v42, %v494_v49  ;;  %v479_v56 = vmax.f32 %v452_v44, %v455_v50 }
 0x18c   :  { %v473_v58 = vrot.slane %v472_v51, 4  ;;  %v456_v59 = vadd.f32 %v444_v2, %v388_v52 }
 0x18d   :  { %v469_v60 = vmax.f32 %v467_v48, %v468_v54  ;;  %v496_v61 = vrot.slane %v495_v55, 2  ;;  %v480_v63 = vrot.slane %v479_v56, 4  ;;  %v463_v6 = vrot.slane %v462_v53, 1 }
 0x18e   :  { %v474_v0 = vmax.f32 %v472_v51, %v473_v58  ;;  %v486_v5 = vmax.f32 %v453_v57, %v456_v59 }
 0x18f   :  { %v497_v8 = vmax.f32 %v495_v55, %v496_v61  ;;  %v481_v10 = vmax.f32 %v479_v56, %v480_v63  ;;  %v470_v12 = vrot.slane %v469_v60, 1  ;;  %v464_v21 = vmax.f32 %v462_v53, %v463_v6 }
 0x190   :  { %v475_v13 = vrot.slane %v474_v0, 2  ;;  %v487_v14 = vrot.slane %v486_v5, 4 }
 0x191   :  { %v498_v16 = vrot.slane %v497_v8, 1  ;;  %v482_v18 = vrot.slane %v481_v10, 2  ;;  %v471_v24 = vmax.f32 %v469_v60, %v470_v12  ;;  %v517_v9 = vadd.f32 %v505_v22, %v464_v21 }
 0x192   :  { %v476_v19 = vmax.f32 %v474_v0, %v475_v13  ;;  %v488_v20 = vmax.f32 %v486_v5, %v487_v14  ;;  %v583_v5 = vld [vmem:[%s1489_s5] sm:$0x3]  ;;  %s1303_s5 = scalar_lea.vmem %s961_s26, 64 }
 0x193   :  { %v499_v3 = vmax.f32 %v497_v8, %v498_v16  ;;  %v483_v23 = vmax.f32 %v481_v10, %v482_v18  ;;  %v518_v34 = vadd.f32 %v509_v26, %v471_v24  ;;  %v523_v39 = vmax.f32 %v517_v9, 0.0  ;;  %p1304_p6 = scmp.ne.s32.totalorder %s961_s26, %s1303_s5  ;;  %p1309_p8 = scmp.lt.s32.totalorder %s1303_s5, %s1303_s5 }
 0x194   :  { %v477_v2 = vrot.slane %v476_v19, 1  ;;  %v489_v25 = vrot.slane %v488_v20, 2  ;;  %v588_v10 = vrot.slane %v583_v5, %v504_v7  ;;  %v592_v12 = vrot.slane %v583_v5, %v508_v15 }
 0x195   :  { %v522_v27 = vadd.f32 %v513_v17, %v499_v3  ;;  %v484_v28 = vrot.slane %v483_v23, 1  ;;  %v524_v44 = vmax.f32 %v518_v34, 0.0  ;;  %v529_v49 = vpack.c.bf16 %v523_v39, %v523_v39  ;;  %p1310_p9 = por %p1309_p8, %p1308_p7 }
 0x196   :  { %v478_v29 = vmax.f32 %v476_v19, %v477_v2  ;;  %v490_v30 = vmax.f32 %v488_v20, %v489_v25 }
 0x197   :  { %v528_v4 = vmax.f32 %v522_v27, 0.0  ;;  %v485_v31 = vmax.f32 %v483_v23, %v484_v28  ;;  %v530_v52 = vpack.c.bf16 %v524_v44, %v524_v44  ;;  %v601_v57 = vunpack.c.l.b16 %v529_v49  ;;  %p1311_p10 = pnand %p1310_p9, %p1304_p6 }
 0x198   :  { %v519_v32 = vadd.f32 %v513_v17, %v478_v29  ;;  %v491_v33 = vrot.slane %v490_v30, 1 }
 0x199   :  { %v534_v35 = vpack.c.bf16 %v528_v4, %v528_v4  ;;  %v520_v36 = vadd.f32 %v505_v22, %v485_v31  ;;  %v602_v58 = vunpack.c.l.b16 %v530_v52 }
 0x19a   :  { %v525_v37 = vmax.f32 %v519_v32, 0.0  ;;  %v492_v38 = vmax.f32 %v490_v30, %v491_v33 }
 0x19b   :  { %v606_v40 = vunpack.c.l.b16 %v534_v35  ;;  %v526_v41 = vmax.f32 %v520_v36, 0.0 }
 0x19c   :  { %v531_v42 = vpack.c.bf16 %v525_v37, %v525_v37  ;;  %v521_v43 = vadd.f32 %v509_v26, %v492_v38 }
 0x19d   :  { %v532_v45 = vpack.c.bf16 %v526_v41, %v526_v41  ;;  %v612_v46 = vrot.slane %v606_v40, 7 }
 0x19e   :  { %v603_v47 = vunpack.c.l.b16 %v531_v42  ;;  %v527_v48 = vmax.f32 %v521_v43, 0.0 }
 0x19f   :  { %v604_v50 = vunpack.c.l.b16 %v532_v45 }
 0x1a0   :  { %v613_v51 = vsel %vm608_vm6, %v612_v46, %v603_v47  ;;  %v533_v53 = vpack.c.bf16 %v527_v48, %v527_v48 }
 0x1a1   :  { %v607_v54 = vrot.slane %v604_v50, 7  ;;  %v616_v55 = vpack.c.b16 %v613_v51, %v613_v51 }
 0x1a2   :  { %v605_v56 = vunpack.c.l.b16 %v533_v53 }
 0x1a3   :  { %934 = vmatmul.mubr.bf16.vlgmr.msra.gmra.mxu1 %v616_v55  ;;  %v609_v60 = vsel %vm608_vm6, %v607_v54, %v601_v57 }
 0x1a4   :  { %v610_v59 = vrot.slane %v605_v56, 7  ;;  %v614_v63 = vpack.c.b16 %v609_v60, %v609_v60 }
 0x1a6   :  { %v611_v61 = vsel %vm608_vm6, %v610_v59, %v602_v58 }
 0x1a7   :  { %v615_v62 = vpack.c.b16 %v611_v61, %v611_v61 }
 0x1a9   :  { %892 = vmatprep.mubr.bf16.mxu0 %v615_v62 }
 0x1aa   :  { %893 = vmatmul.mubr.bf16.vlgmr.msra.gmra.mxu0 %v614_v63 }
 0x263   :  { %v935_v0 = vpop.f32.mrf.mxu1 }
 0x265   :  { %v937_v6 = vpop.f32.mrf.mxu1 }
 0x267   :  { %v939_v8 = vpop.f32.mrf.mxu1 }
 0x269   :  { %v940_v11 = vpop.f32.mrf.mxu1 }
 0x26a   :  { %v894_v13 = vpop.f32.mrf.mxu0 }
 0x26b   :  { %v895_v14 = vadd.f32 %v894_v13, %v588_v10 }
 0x26c   :  { %v896_v16 = vpop.f32.mrf.mxu0 }
 0x26d   :  { %v897_v17 = vadd.f32 %v896_v16, %v592_v12  ;;  %v936_v19 = vadd.f32 %v935_v0, %v895_v14 }
 0x26e   :  { %v898_v18 = vpop.f32.mrf.mxu0 }
 0x26f   :  { %v938_v20 = vadd.f32 %v937_v6, %v897_v17 }
 0x270   :  { %v899_v21 = vpop.f32.mrf.mxu0 }
 0x271   :  { %v944_v22 = vcombine.low %v936_v19, %v938_v20 }
 0x273   :  { %1043 = vst.sshfl [vmem:[#allocation10] sm:$0x33 pattern:$0x76325410] %v944_v22 }
 0x274   :  { %1314 = shalt.err (!%p1311_p10)
}
 0x275   :  { %963 = dma.vmem_to_hbm [thread:$0]  %s961_s26, 64, %s1490_s6, [#allocation4]  }
 0x276   :  { %1329 = dma.done.wait [#allocation4], 64  }
 0x277   :  { %1330 = vsyncadd [#allocation4], 4294967232 }
 0x278   :  { %967 = vsyncpa [#allocation3], 1 }
 0x279   :  { %968 = vsyncpa [#allocation6], 1 }
 0x27a   :  { %969 = vsyncpa [#allocation9], 1 }
 0x27b   :  { %970 = vsyncpa [#allocation4], 1 }

</bundles_post_ra>
